<compile_context>
chip_gen: v7x
topology: tpu7x:2x2x1
jax: 0.10.0
libtpu: 0.0.40
codegen_flags: <defaults>
</compile_context>

<pallas_src>
import jax
import jax.numpy as jnp
import numpy as np
from jax import lax
from jax.experimental import pallas as pl
from jax.experimental.pallas import tpu as pltpu


def _make_convgru_kernel(H, W, Cp, Ch):
    HW = H * W

    def im2col(a, masks):
        # a: (C, HW) channel-major flat-spatial slab -> (9*C, HW) im2col.
        # Tap (dh, dw) is a uniform flat shift by s = (dh-1)*W + (dw-1),
        # realized as a lane roll (XLU) + 0/1 boundary mask (VPU).
        slabs = []
        for t in range(9):
            dh, dw = divmod(t, 3)
            s = (dh - 1) * W + (dw - 1)
            shift = (-s) % HW
            rolled = a if shift == 0 else pltpu.roll(a, shift, axis=1)
            slabs.append(rolled * masks[t:t + 1, :])
        return jnp.concatenate(slabs, axis=0)

    def kernel(x_ref, h_ref, mask_ref, wx_ref, wgh_ref, wch_ref,
               bg_ref, bc_ref, out_ref):
        x = x_ref[0]              # (Cp, HW) f32, zero-padded input channels
        h = h_ref[0]              # (Ch, HW) f32
        masks = mask_ref[...]     # (9, HW) 0/1 f32 tap-validity masks

        ax = im2col(x, masks)     # (9*Cp, HW)
        ah = im2col(h, masks)     # (9*Ch, HW)

        # Fused x conv: rows [:2*Ch] feed the gates, rows [2*Ch:] the candidate.
        conv_x = jnp.dot(wx_ref[...], ax, preferred_element_type=jnp.float32)
        conv_h = jnp.dot(wgh_ref[...], ah, preferred_element_type=jnp.float32)

        gate = conv_x[:2 * Ch, :] + conv_h + bg_ref[...]   # (2*Ch, HW)
        reset_gate = jax.nn.sigmoid(gate[:Ch, :])
        update_gate = jax.nn.sigmoid(gate[Ch:, :])
        gated_hidden = reset_gate * h                      # (Ch, HW)

        ag = im2col(gated_hidden, masks)                   # (9*Ch, HW)
        conv_g = jnp.dot(wch_ref[...], ag, preferred_element_type=jnp.float32)
        cand = jnp.tanh(conv_x[2 * Ch:, :] + conv_g + bc_ref[...])

        next_h = update_gate * h + (1.0 - update_gate) * cand
        out_ref[0] = next_h.astype(out_ref.dtype)

    return kernel


def convgru_cell(x_nchw, h_nchw, wg, bg, wc, bc):
    """ConvGRUCell forward. x_nchw: (B,Cin,H,W), h_nchw: (B,Ch,H,W).
    wg: (2*Ch, Cin+Ch, 3, 3) OIHW; wc: (Ch, Cin+Ch, 3, 3) OIHW.
    Returns next hidden state in NCHW, matching the PyTorch module."""
    B, Cin, H, W = x_nchw.shape
    Ch = h_nchw.shape[1]
    HW = H * W
    Cp = ((Cin + 7) // 8) * 8          # sublane-align the x channel axis

    x = x_nchw.astype(jnp.float32)
    if Cp != Cin:
        x = jnp.pad(x, ((0, 0), (0, Cp - Cin), (0, 0), (0, 0)))
    x_flat = x.reshape(B, Cp, HW)                       # pure reshape (NCHW)
    h_flat = h_nchw.astype(jnp.float32).reshape(B, Ch, HW)

    # Split the concatenated-channel conv weights into x / h halves and fuse
    # the two x-convs along Cout so x is processed once.
    wg_f = wg.astype(jnp.float32)
    wc_f = wc.astype(jnp.float32)
    wgx, wgh = wg_f[:, :Cin], wg_f[:, Cin:]
    wcx, wch = wc_f[:, :Cin], wc_f[:, Cin:]
    wx = jnp.concatenate([wgx, wcx], axis=0)            # (3*Ch, Cin, 3, 3)
    if Cp != Cin:
        wx = jnp.pad(wx, ((0, 0), (0, Cp - Cin), (0, 0), (0, 0)))

    def to_mat(w):
        # (O, C, 3, 3) OIHW -> (O, 9*C) with K ordered tap-major, channel-minor
        # to match the in-kernel im2col row order.
        o, c = w.shape[0], w.shape[1]
        return jnp.transpose(w, (0, 2, 3, 1)).reshape(o, 9 * c)

    wx_mat = to_mat(wx)        # (3*Ch, 9*Cp)
    wgh_mat = to_mat(wgh)      # (2*Ch, 9*Ch)
    wch_mat = to_mat(wch)      # (Ch,   9*Ch)
    bg2 = bg.reshape(2 * Ch, 1).astype(jnp.float32)
    bc2 = bc.reshape(Ch, 1).astype(jnp.float32)

    # Tap-validity masks over the flattened spatial axis (host constants).
    hh, ww = np.meshgrid(np.arange(H), np.arange(W), indexing='ij')
    mask_list = []
    for dh in range(3):
        for dw in range(3):
            ok = ((hh + dh - 1 >= 0) & (hh + dh - 1 <= H - 1) &
                  (ww + dw - 1 >= 0) & (ww + dw - 1 <= W - 1))
            mask_list.append(ok.reshape(HW))
    masks = jnp.asarray(np.stack(mask_list, axis=0).astype(np.float32))

    kernel = _make_convgru_kernel(H, W, Cp, Ch)

    def act_map(b):
        return (b, 0, 0)

    def const2_map(b):
        return (0, 0)

    out_flat = pl.pallas_call(
        kernel,
        out_shape=jax.ShapeDtypeStruct((B, Ch, HW), jnp.float32),
        grid_spec=pltpu.PrefetchScalarGridSpec(
            num_scalar_prefetch=0,
            grid=(B,),
            in_specs=[
                pl.BlockSpec((1, Cp, HW), act_map),          # x  (lane-dense)
                pl.BlockSpec((1, Ch, HW), act_map),          # h  (lane-dense)
                pl.BlockSpec((9, HW), const2_map),           # tap masks
                pl.BlockSpec((3 * Ch, 9 * Cp), const2_map),  # fused x weights
                pl.BlockSpec((2 * Ch, 9 * Ch), const2_map),  # gate-h weights
                pl.BlockSpec((Ch, 9 * Ch), const2_map),      # cand-h weights
                pl.BlockSpec((2 * Ch, 1), const2_map),       # gate bias
                pl.BlockSpec((Ch, 1), const2_map),           # cand bias
            ],
            out_specs=pl.BlockSpec((1, Ch, HW), act_map),    # lane-dense out
        ),
        compiler_params=pltpu.CompilerParams(
            dimension_semantics=("parallel",)),              # v7x megacore
    )(x_flat, h_flat, masks, wx_mat, wgh_mat, wch_mat, bg2, bc2)

    return out_flat.reshape(B, Ch, H, W)                     # pure reshape


def convgru_cell_ref(x, h, wg, bg, wc, bc):
    """Pure-JAX reference replicating the PyTorch forward (NCHW / OIHW)."""
    dn = ('NCHW', 'OIHW', 'NCHW')
    cat1 = jnp.concatenate([x, h], axis=1)
    c1 = lax.conv_general_dilated(cat1, wg, (1, 1), 'SAME',
                                  dimension_numbers=dn)
    c1 = c1 + bg[None, :, None, None]
    rt, ut = jnp.split(c1, 2, axis=1)
    reset_gate = jax.nn.sigmoid(rt)
    update_gate = jax.nn.sigmoid(ut)
    gated_hidden = reset_gate * h
    cat2 = jnp.concatenate([x, gated_hidden], axis=1)
    p1 = lax.conv_general_dilated(cat2, wc, (1, 1), 'SAME',
                                  dimension_numbers=dn)
    p1 = p1 + bc[None, :, None, None]
    ct = jnp.tanh(p1)
    return update_gate * h + (1.0 - update_gate) * ct


if __name__ == "__main__":
    # Small shapes consistent with the module: B=2, input_size=4,
    # hidden_size=8, spatial 16x16, kernel_size=3.
    B, Cin, Ch, H, W = 2, 4, 8, 16, 16

    key = jax.random.PRNGKey(0)
    kx, kh, kwg, kbg, kwc, kbc = jax.random.split(key, 6)

    x = jax.random.normal(kx, (B, Cin, H, W), jnp.float32)
    hidden = jax.random.normal(kh, (B, Ch, H, W), jnp.float32)

    # Deterministic parameter init (shapes from nn.Conv2d in __init__).
    wg = 0.1 * jax.random.normal(kwg, (2 * Ch, Cin + Ch, 3, 3), jnp.float32)
    bg = 0.1 * jax.random.normal(kbg, (2 * Ch,), jnp.float32)
    wc = 0.1 * jax.random.normal(kwc, (Ch, Cin + Ch, 3, 3), jnp.float32)
    bc = 0.1 * jax.random.normal(kbc, (Ch,), jnp.float32)

    out = convgru_cell(x, hidden, wg, bg, wc, bc)
    out = jax.block_until_ready(out)

    ref = jax.block_until_ready(convgru_cell_ref(x, hidden, wg, bg, wc, bc))
    assert out.shape == (B, Ch, H, W), out.shape
    assert jnp.allclose(out, ref, atol=5e-4, rtol=5e-4), (
        float(jnp.max(jnp.abs(out - ref))))

    print("KERNEL_OK")
</pallas_src>

<mosaic_0001>
module attributes {stable_mosaic.version = 11 : i64} {
  func.func @kernel(%arg0: i32, %arg1: memref<1x8x256xf32, #tpu.memory_space<vmem>>, %arg2: memref<1x8x256xf32, #tpu.memory_space<vmem>>, %arg3: memref<9x256xf32, #tpu.memory_space<vmem>>, %arg4: memref<24x72xf32, #tpu.memory_space<vmem>>, %arg5: memref<16x72xf32, #tpu.memory_space<vmem>>, %arg6: memref<8x72xf32, #tpu.memory_space<vmem>>, %arg7: memref<16x1xf32, #tpu.memory_space<vmem>>, %arg8: memref<8x1xf32, #tpu.memory_space<vmem>>, %arg9: memref<1x8x256xf32, #tpu.memory_space<vmem>>) attributes {dimension_semantics = [#tpu.dimension_semantics<parallel>], iteration_bounds = array<i64: 2>, scalar_prefetch = 0 : i64, scratch_operands = 0 : i64, tpu.core_type = #tpu.core_type<tc>, window_params = [{transform_indices = @transform_0, window_bounds = array<i64: 1, 8, 256>}, {transform_indices = @transform_1, window_bounds = array<i64: 1, 8, 256>}, {pipeline_mode = #tpu.pipeline_mode<synchronous>, transform_indices = @transform_2, window_bounds = array<i64: 9, 256>}, {pipeline_mode = #tpu.pipeline_mode<synchronous>, transform_indices = @transform_3, window_bounds = array<i64: 24, 72>}, {pipeline_mode = #tpu.pipeline_mode<synchronous>, transform_indices = @transform_4, window_bounds = array<i64: 16, 72>}, {pipeline_mode = #tpu.pipeline_mode<synchronous>, transform_indices = @transform_5, window_bounds = array<i64: 8, 72>}, {pipeline_mode = #tpu.pipeline_mode<synchronous>, transform_indices = @transform_6, window_bounds = array<i64: 16, 1>}, {pipeline_mode = #tpu.pipeline_mode<synchronous>, transform_indices = @transform_7, window_bounds = array<i64: 8, 1>}, {transform_indices = @transform_8, window_bounds = array<i64: 1, 8, 256>}]} {
    %c0 = arith.constant 0 : index
    %c0_0 = arith.constant 0 : index
    %c0_1 = arith.constant 0 : index
    %0 = vector.load %arg1[%c0, %c0_0, %c0_1] : memref<1x8x256xf32, #tpu.memory_space<vmem>>, vector<1x8x256xf32>
    %1 = vector.shape_cast %0 : vector<1x8x256xf32> to vector<8x256xf32>
    %c0_2 = arith.constant 0 : index
    %c0_3 = arith.constant 0 : index
    %c0_4 = arith.constant 0 : index
    %2 = vector.load %arg2[%c0_2, %c0_3, %c0_4] : memref<1x8x256xf32, #tpu.memory_space<vmem>>, vector<1x8x256xf32>
    %3 = vector.shape_cast %2 : vector<1x8x256xf32> to vector<8x256xf32>
    %c0_5 = arith.constant 0 : index
    %c0_6 = arith.constant 0 : index
    %4 = vector.load %arg3[%c0_5, %c0_6] : memref<9x256xf32, #tpu.memory_space<vmem>>, vector<9x256xf32>
    %c17_i32 = arith.constant 17 : i32
    %5 = tpu.dynamic_rotate %1 by %c17_i32 dim 1 : vector<8x256xf32>, i32 -> vector<8x256xf32>
    %6 = vector.extract_strided_slice %4 {offsets = [0, 0], sizes = [1, 256], strides = [1, 1]} : vector<9x256xf32> to vector<1x256xf32>
    %7 = vector.broadcast %6 : vector<1x256xf32> to vector<8x256xf32>
    %8 = arith.mulf %5, %7 : vector<8x256xf32>
    %c16_i32 = arith.constant 16 : i32
    %9 = tpu.dynamic_rotate %1 by %c16_i32 dim 1 : vector<8x256xf32>, i32 -> vector<8x256xf32>
    %10 = vector.extract_strided_slice %4 {offsets = [1, 0], sizes = [1, 256], strides = [1, 1]} : vector<9x256xf32> to vector<1x256xf32>
    %11 = vector.broadcast %10 : vector<1x256xf32> to vector<8x256xf32>
    %12 = arith.mulf %9, %11 : vector<8x256xf32>
    %c15_i32 = arith.constant 15 : i32
    %13 = tpu.dynamic_rotate %1 by %c15_i32 dim 1 : vector<8x256xf32>, i32 -> vector<8x256xf32>
    %14 = vector.extract_strided_slice %4 {offsets = [2, 0], sizes = [1, 256], strides = [1, 1]} : vector<9x256xf32> to vector<1x256xf32>
    %15 = vector.broadcast %14 : vector<1x256xf32> to vector<8x256xf32>
    %16 = arith.mulf %13, %15 : vector<8x256xf32>
    %c1_i32 = arith.constant 1 : i32
    %17 = tpu.dynamic_rotate %1 by %c1_i32 dim 1 : vector<8x256xf32>, i32 -> vector<8x256xf32>
    %18 = vector.extract_strided_slice %4 {offsets = [3, 0], sizes = [1, 256], strides = [1, 1]} : vector<9x256xf32> to vector<1x256xf32>
    %19 = vector.broadcast %18 : vector<1x256xf32> to vector<8x256xf32>
    %20 = arith.mulf %17, %19 : vector<8x256xf32>
    %21 = vector.extract_strided_slice %4 {offsets = [4, 0], sizes = [1, 256], strides = [1, 1]} : vector<9x256xf32> to vector<1x256xf32>
    %22 = vector.broadcast %21 : vector<1x256xf32> to vector<8x256xf32>
    %23 = arith.mulf %1, %22 : vector<8x256xf32>
    %c255_i32 = arith.constant 255 : i32
    %24 = tpu.dynamic_rotate %1 by %c255_i32 dim 1 : vector<8x256xf32>, i32 -> vector<8x256xf32>
    %25 = vector.extract_strided_slice %4 {offsets = [5, 0], sizes = [1, 256], strides = [1, 1]} : vector<9x256xf32> to vector<1x256xf32>
    %26 = vector.broadcast %25 : vector<1x256xf32> to vector<8x256xf32>
    %27 = arith.mulf %24, %26 : vector<8x256xf32>
    %c241_i32 = arith.constant 241 : i32
    %28 = tpu.dynamic_rotate %1 by %c241_i32 dim 1 : vector<8x256xf32>, i32 -> vector<8x256xf32>
    %29 = vector.extract_strided_slice %4 {offsets = [6, 0], sizes = [1, 256], strides = [1, 1]} : vector<9x256xf32> to vector<1x256xf32>
    %30 = vector.broadcast %29 : vector<1x256xf32> to vector<8x256xf32>
    %31 = arith.mulf %28, %30 : vector<8x256xf32>
    %c240_i32 = arith.constant 240 : i32
    %32 = tpu.dynamic_rotate %1 by %c240_i32 dim 1 : vector<8x256xf32>, i32 -> vector<8x256xf32>
    %33 = vector.extract_strided_slice %4 {offsets = [7, 0], sizes = [1, 256], strides = [1, 1]} : vector<9x256xf32> to vector<1x256xf32>
    %34 = vector.broadcast %33 : vector<1x256xf32> to vector<8x256xf32>
    %35 = arith.mulf %32, %34 : vector<8x256xf32>
    %c239_i32 = arith.constant 239 : i32
    %36 = tpu.dynamic_rotate %1 by %c239_i32 dim 1 : vector<8x256xf32>, i32 -> vector<8x256xf32>
    %37 = vector.extract_strided_slice %4 {offsets = [8, 0], sizes = [1, 256], strides = [1, 1]} : vector<9x256xf32> to vector<1x256xf32>
    %38 = vector.broadcast %37 : vector<1x256xf32> to vector<8x256xf32>
    %39 = arith.mulf %36, %38 : vector<8x256xf32>
    %40 = tpu.concatenate %8, %12, %16, %20, %23, %27, %31, %35, %39 in 0 : vector<8x256xf32>, vector<8x256xf32>, vector<8x256xf32>, vector<8x256xf32>, vector<8x256xf32>, vector<8x256xf32>, vector<8x256xf32>, vector<8x256xf32>, vector<8x256xf32> -> vector<72x256xf32>
    %c17_i32_7 = arith.constant 17 : i32
    %41 = tpu.dynamic_rotate %3 by %c17_i32_7 dim 1 : vector<8x256xf32>, i32 -> vector<8x256xf32>
    %42 = vector.extract_strided_slice %4 {offsets = [0, 0], sizes = [1, 256], strides = [1, 1]} : vector<9x256xf32> to vector<1x256xf32>
    %43 = vector.broadcast %42 : vector<1x256xf32> to vector<8x256xf32>
    %44 = arith.mulf %41, %43 : vector<8x256xf32>
    %c16_i32_8 = arith.constant 16 : i32
    %45 = tpu.dynamic_rotate %3 by %c16_i32_8 dim 1 : vector<8x256xf32>, i32 -> vector<8x256xf32>
    %46 = vector.extract_strided_slice %4 {offsets = [1, 0], sizes = [1, 256], strides = [1, 1]} : vector<9x256xf32> to vector<1x256xf32>
    %47 = vector.broadcast %46 : vector<1x256xf32> to vector<8x256xf32>
    %48 = arith.mulf %45, %47 : vector<8x256xf32>
    %c15_i32_9 = arith.constant 15 : i32
    %49 = tpu.dynamic_rotate %3 by %c15_i32_9 dim 1 : vector<8x256xf32>, i32 -> vector<8x256xf32>
    %50 = vector.extract_strided_slice %4 {offsets = [2, 0], sizes = [1, 256], strides = [1, 1]} : vector<9x256xf32> to vector<1x256xf32>
    %51 = vector.broadcast %50 : vector<1x256xf32> to vector<8x256xf32>
    %52 = arith.mulf %49, %51 : vector<8x256xf32>
    %c1_i32_10 = arith.constant 1 : i32
    %53 = tpu.dynamic_rotate %3 by %c1_i32_10 dim 1 : vector<8x256xf32>, i32 -> vector<8x256xf32>
    %54 = vector.extract_strided_slice %4 {offsets = [3, 0], sizes = [1, 256], strides = [1, 1]} : vector<9x256xf32> to vector<1x256xf32>
    %55 = vector.broadcast %54 : vector<1x256xf32> to vector<8x256xf32>
    %56 = arith.mulf %53, %55 : vector<8x256xf32>
    %57 = vector.extract_strided_slice %4 {offsets = [4, 0], sizes = [1, 256], strides = [1, 1]} : vector<9x256xf32> to vector<1x256xf32>
    %58 = vector.broadcast %57 : vector<1x256xf32> to vector<8x256xf32>
    %59 = arith.mulf %3, %58 : vector<8x256xf32>
    %c255_i32_11 = arith.constant 255 : i32
    %60 = tpu.dynamic_rotate %3 by %c255_i32_11 dim 1 : vector<8x256xf32>, i32 -> vector<8x256xf32>
    %61 = vector.extract_strided_slice %4 {offsets = [5, 0], sizes = [1, 256], strides = [1, 1]} : vector<9x256xf32> to vector<1x256xf32>
    %62 = vector.broadcast %61 : vector<1x256xf32> to vector<8x256xf32>
    %63 = arith.mulf %60, %62 : vector<8x256xf32>
    %c241_i32_12 = arith.constant 241 : i32
    %64 = tpu.dynamic_rotate %3 by %c241_i32_12 dim 1 : vector<8x256xf32>, i32 -> vector<8x256xf32>
    %65 = vector.extract_strided_slice %4 {offsets = [6, 0], sizes = [1, 256], strides = [1, 1]} : vector<9x256xf32> to vector<1x256xf32>
    %66 = vector.broadcast %65 : vector<1x256xf32> to vector<8x256xf32>
    %67 = arith.mulf %64, %66 : vector<8x256xf32>
    %c240_i32_13 = arith.constant 240 : i32
    %68 = tpu.dynamic_rotate %3 by %c240_i32_13 dim 1 : vector<8x256xf32>, i32 -> vector<8x256xf32>
    %69 = vector.extract_strided_slice %4 {offsets = [7, 0], sizes = [1, 256], strides = [1, 1]} : vector<9x256xf32> to vector<1x256xf32>
    %70 = vector.broadcast %69 : vector<1x256xf32> to vector<8x256xf32>
    %71 = arith.mulf %68, %70 : vector<8x256xf32>
    %c239_i32_14 = arith.constant 239 : i32
    %72 = tpu.dynamic_rotate %3 by %c239_i32_14 dim 1 : vector<8x256xf32>, i32 -> vector<8x256xf32>
    %73 = vector.extract_strided_slice %4 {offsets = [8, 0], sizes = [1, 256], strides = [1, 1]} : vector<9x256xf32> to vector<1x256xf32>
    %74 = vector.broadcast %73 : vector<1x256xf32> to vector<8x256xf32>
    %75 = arith.mulf %72, %74 : vector<8x256xf32>
    %76 = tpu.concatenate %44, %48, %52, %56, %59, %63, %67, %71, %75 in 0 : vector<8x256xf32>, vector<8x256xf32>, vector<8x256xf32>, vector<8x256xf32>, vector<8x256xf32>, vector<8x256xf32>, vector<8x256xf32>, vector<8x256xf32>, vector<8x256xf32> -> vector<72x256xf32>
    %c0_15 = arith.constant 0 : index
    %c0_16 = arith.constant 0 : index
    %77 = vector.load %arg4[%c0_15, %c0_16] : memref<24x72xf32, #tpu.memory_space<vmem>>, vector<24x72xf32>
    %cst = arith.constant dense<0.000000e+00> : vector<24x256xf32>
    %78 = tpu.matmul %77, %40, %cst {dimension_numbers = #tpu.dot_dimension_numbers<[1], [0], [0], [1], [0, 0, 1, 1], [], []>} : vector<24x72xf32>, vector<72x256xf32>, vector<24x256xf32> -> vector<24x256xf32>
    %c0_17 = arith.constant 0 : index
    %c0_18 = arith.constant 0 : index
    %79 = vector.load %arg5[%c0_17, %c0_18] : memref<16x72xf32, #tpu.memory_space<vmem>>, vector<16x72xf32>
    %cst_19 = arith.constant dense<0.000000e+00> : vector<16x256xf32>
    %80 = tpu.matmul %79, %76, %cst_19 {dimension_numbers = #tpu.dot_dimension_numbers<[1], [0], [0], [1], [0, 0, 1, 1], [], []>} : vector<16x72xf32>, vector<72x256xf32>, vector<16x256xf32> -> vector<16x256xf32>
    %81 = vector.extract_strided_slice %78 {offsets = [0, 0], sizes = [16, 256], strides = [1, 1]} : vector<24x256xf32> to vector<16x256xf32>
    %82 = arith.addf %81, %80 : vector<16x256xf32>
    %c0_20 = arith.constant 0 : index
    %c0_21 = arith.constant 0 : index
    %83 = vector.load %arg7[%c0_20, %c0_21] : memref<16x1xf32, #tpu.memory_space<vmem>>, vector<16x1xf32>
    %84 = vector.broadcast %83 : vector<16x1xf32> to vector<16x256xf32>
    %85 = arith.addf %82, %84 : vector<16x256xf32>
    %86 = vector.extract_strided_slice %85 {offsets = [0, 0], sizes = [8, 256], strides = [1, 1]} : vector<16x256xf32> to vector<8x256xf32>
    %87 = arith.negf %86 : vector<8x256xf32>
    %88 = math.exp %87 : vector<8x256xf32>
    %cst_22 = arith.constant 1.000000e+00 : f32
    %89 = vector.broadcast %cst_22 : f32 to vector<8x256xf32>
    %90 = arith.addf %89, %88 : vector<8x256xf32>
    %91 = arith.divf %89, %90 : vector<8x256xf32>
    %92 = vector.extract_strided_slice %85 {offsets = [8, 0], sizes = [8, 256], strides = [1, 1]} : vector<16x256xf32> to vector<8x256xf32>
    %93 = arith.negf %92 : vector<8x256xf32>
    %94 = math.exp %93 : vector<8x256xf32>
    %cst_23 = arith.constant 1.000000e+00 : f32
    %95 = vector.broadcast %cst_23 : f32 to vector<8x256xf32>
    %96 = arith.addf %95, %94 : vector<8x256xf32>
    %97 = arith.divf %95, %96 : vector<8x256xf32>
    %98 = arith.mulf %91, %3 : vector<8x256xf32>
    %c17_i32_24 = arith.constant 17 : i32
    %99 = tpu.dynamic_rotate %98 by %c17_i32_24 dim 1 : vector<8x256xf32>, i32 -> vector<8x256xf32>
    %100 = vector.extract_strided_slice %4 {offsets = [0, 0], sizes = [1, 256], strides = [1, 1]} : vector<9x256xf32> to vector<1x256xf32>
    %101 = vector.broadcast %100 : vector<1x256xf32> to vector<8x256xf32>
    %102 = arith.mulf %99, %101 : vector<8x256xf32>
    %c16_i32_25 = arith.constant 16 : i32
    %103 = tpu.dynamic_rotate %98 by %c16_i32_25 dim 1 : vector<8x256xf32>, i32 -> vector<8x256xf32>
    %104 = vector.extract_strided_slice %4 {offsets = [1, 0], sizes = [1, 256], strides = [1, 1]} : vector<9x256xf32> to vector<1x256xf32>
    %105 = vector.broadcast %104 : vector<1x256xf32> to vector<8x256xf32>
    %106 = arith.mulf %103, %105 : vector<8x256xf32>
    %c15_i32_26 = arith.constant 15 : i32
    %107 = tpu.dynamic_rotate %98 by %c15_i32_26 dim 1 : vector<8x256xf32>, i32 -> vector<8x256xf32>
    %108 = vector.extract_strided_slice %4 {offsets = [2, 0], sizes = [1, 256], strides = [1, 1]} : vector<9x256xf32> to vector<1x256xf32>
    %109 = vector.broadcast %108 : vector<1x256xf32> to vector<8x256xf32>
    %110 = arith.mulf %107, %109 : vector<8x256xf32>
    %c1_i32_27 = arith.constant 1 : i32
    %111 = tpu.dynamic_rotate %98 by %c1_i32_27 dim 1 : vector<8x256xf32>, i32 -> vector<8x256xf32>
    %112 = vector.extract_strided_slice %4 {offsets = [3, 0], sizes = [1, 256], strides = [1, 1]} : vector<9x256xf32> to vector<1x256xf32>
    %113 = vector.broadcast %112 : vector<1x256xf32> to vector<8x256xf32>
    %114 = arith.mulf %111, %113 : vector<8x256xf32>
    %115 = vector.extract_strided_slice %4 {offsets = [4, 0], sizes = [1, 256], strides = [1, 1]} : vector<9x256xf32> to vector<1x256xf32>
    %116 = vector.broadcast %115 : vector<1x256xf32> to vector<8x256xf32>
    %117 = arith.mulf %98, %116 : vector<8x256xf32>
    %c255_i32_28 = arith.constant 255 : i32
    %118 = tpu.dynamic_rotate %98 by %c255_i32_28 dim 1 : vector<8x256xf32>, i32 -> vector<8x256xf32>
    %119 = vector.extract_strided_slice %4 {offsets = [5, 0], sizes = [1, 256], strides = [1, 1]} : vector<9x256xf32> to vector<1x256xf32>
    %120 = vector.broadcast %119 : vector<1x256xf32> to vector<8x256xf32>
    %121 = arith.mulf %118, %120 : vector<8x256xf32>
    %c241_i32_29 = arith.constant 241 : i32
    %122 = tpu.dynamic_rotate %98 by %c241_i32_29 dim 1 : vector<8x256xf32>, i32 -> vector<8x256xf32>
    %123 = vector.extract_strided_slice %4 {offsets = [6, 0], sizes = [1, 256], strides = [1, 1]} : vector<9x256xf32> to vector<1x256xf32>
    %124 = vector.broadcast %123 : vector<1x256xf32> to vector<8x256xf32>
    %125 = arith.mulf %122, %124 : vector<8x256xf32>
    %c240_i32_30 = arith.constant 240 : i32
    %126 = tpu.dynamic_rotate %98 by %c240_i32_30 dim 1 : vector<8x256xf32>, i32 -> vector<8x256xf32>
    %127 = vector.extract_strided_slice %4 {offsets = [7, 0], sizes = [1, 256], strides = [1, 1]} : vector<9x256xf32> to vector<1x256xf32>
    %128 = vector.broadcast %127 : vector<1x256xf32> to vector<8x256xf32>
    %129 = arith.mulf %126, %128 : vector<8x256xf32>
    %c239_i32_31 = arith.constant 239 : i32
    %130 = tpu.dynamic_rotate %98 by %c239_i32_31 dim 1 : vector<8x256xf32>, i32 -> vector<8x256xf32>
    %131 = vector.extract_strided_slice %4 {offsets = [8, 0], sizes = [1, 256], strides = [1, 1]} : vector<9x256xf32> to vector<1x256xf32>
    %132 = vector.broadcast %131 : vector<1x256xf32> to vector<8x256xf32>
    %133 = arith.mulf %130, %132 : vector<8x256xf32>
    %134 = tpu.concatenate %102, %106, %110, %114, %117, %121, %125, %129, %133 in 0 : vector<8x256xf32>, vector<8x256xf32>, vector<8x256xf32>, vector<8x256xf32>, vector<8x256xf32>, vector<8x256xf32>, vector<8x256xf32>, vector<8x256xf32>, vector<8x256xf32> -> vector<72x256xf32>
    %c0_32 = arith.constant 0 : index
    %c0_33 = arith.constant 0 : index
    %135 = vector.load %arg6[%c0_32, %c0_33] : memref<8x72xf32, #tpu.memory_space<vmem>>, vector<8x72xf32>
    %cst_34 = arith.constant dense<0.000000e+00> : vector<8x256xf32>
    %136 = tpu.matmul %135, %134, %cst_34 {dimension_numbers = #tpu.dot_dimension_numbers<[1], [0], [0], [1], [0, 0, 1, 1], [], []>} : vector<8x72xf32>, vector<72x256xf32>, vector<8x256xf32> -> vector<8x256xf32>
    %137 = vector.extract_strided_slice %78 {offsets = [16, 0], sizes = [8, 256], strides = [1, 1]} : vector<24x256xf32> to vector<8x256xf32>
    %138 = arith.addf %137, %136 : vector<8x256xf32>
    %c0_35 = arith.constant 0 : index
    %c0_36 = arith.constant 0 : index
    %139 = vector.load %arg8[%c0_35, %c0_36] : memref<8x1xf32, #tpu.memory_space<vmem>>, vector<8x1xf32>
    %140 = vector.broadcast %139 : vector<8x1xf32> to vector<8x256xf32>
    %141 = arith.addf %138, %140 : vector<8x256xf32>
    %142 = math.tanh %141 : vector<8x256xf32>
    %143 = arith.mulf %97, %3 : vector<8x256xf32>
    %cst_37 = arith.constant 1.000000e+00 : f32
    %144 = vector.broadcast %cst_37 : f32 to vector<8x256xf32>
    %145 = arith.subf %144, %97 : vector<8x256xf32>
    %146 = arith.mulf %145, %142 : vector<8x256xf32>
    %147 = arith.addf %143, %146 : vector<8x256xf32>
    %c0_38 = arith.constant 0 : index
    %c0_39 = arith.constant 0 : index
    %c0_40 = arith.constant 0 : index
    %148 = vector.load %arg9[%c0_38, %c0_39, %c0_40] : memref<1x8x256xf32, #tpu.memory_space<vmem>>, vector<1x8x256xf32>
    %149 = vector.shape_cast %148 : vector<1x8x256xf32> to vector<8x256xf32>
    %150 = vector.shape_cast %147 : vector<8x256xf32> to vector<1x8x256xf32>
    tpu.vector_store %arg9[%c0_38, %c0_39, %c0_40], %150 {strides = array<i32>} : memref<1x8x256xf32, #tpu.memory_space<vmem>>, vector<1x8x256xf32>,
    return
  }
  func.func @transform_0(%arg0: i32) -> (i32, i32, i32) {
    %c0_i32 = arith.constant 0 : i32
    %c0_i32_0 = arith.constant 0 : i32
    %c0_i32_1 = arith.constant 0 : i32
    return %arg0, %c0_i32, %c0_i32_0 : i32, i32, i32
  }
  func.func @transform_1(%arg0: i32) -> (i32, i32, i32) {
    %c0_i32 = arith.constant 0 : i32
    %c0_i32_0 = arith.constant 0 : i32
    %c0_i32_1 = arith.constant 0 : i32
    return %arg0, %c0_i32, %c0_i32_0 : i32, i32, i32
  }
  func.func @transform_2(%arg0: i32) -> (i32, i32) {
    %c0_i32 = arith.constant 0 : i32
    %c0_i32_0 = arith.constant 0 : i32
    %c0_i32_1 = arith.constant 0 : i32
    return %c0_i32, %c0_i32_0 : i32, i32
  }
  func.func @transform_3(%arg0: i32) -> (i32, i32) {
    %c0_i32 = arith.constant 0 : i32
    %c0_i32_0 = arith.constant 0 : i32
    %c0_i32_1 = arith.constant 0 : i32
    return %c0_i32, %c0_i32_0 : i32, i32
  }
  func.func @transform_4(%arg0: i32) -> (i32, i32) {
    %c0_i32 = arith.constant 0 : i32
    %c0_i32_0 = arith.constant 0 : i32
    %c0_i32_1 = arith.constant 0 : i32
    return %c0_i32, %c0_i32_0 : i32, i32
  }
  func.func @transform_5(%arg0: i32) -> (i32, i32) {
    %c0_i32 = arith.constant 0 : i32
    %c0_i32_0 = arith.constant 0 : i32
    %c0_i32_1 = arith.constant 0 : i32
    return %c0_i32, %c0_i32_0 : i32, i32
  }
  func.func @transform_6(%arg0: i32) -> (i32, i32) {
    %c0_i32 = arith.constant 0 : i32
    %c0_i32_0 = arith.constant 0 : i32
    %c0_i32_1 = arith.constant 0 : i32
    return %c0_i32, %c0_i32_0 : i32, i32
  }
  func.func @transform_7(%arg0: i32) -> (i32, i32) {
    %c0_i32 = arith.constant 0 : i32
    %c0_i32_0 = arith.constant 0 : i32
    %c0_i32_1 = arith.constant 0 : i32
    return %c0_i32, %c0_i32_0 : i32, i32
  }
  func.func @transform_8(%arg0: i32) -> (i32, i32, i32) {
    %c0_i32 = arith.constant 0 : i32
    %c0_i32_0 = arith.constant 0 : i32
    %c0_i32_1 = arith.constant 0 : i32
    return %arg0, %c0_i32, %c0_i32_0 : i32, i32, i32
  }
}

</mosaic_0001>

<bundles_post_ra>
// kernel: tpu_custom_call.1
= control target key start
LH: loop header
LB: loop body
LE: loop exit
PB: predicated region body
PF: predicated region fallthrough
CT: control target
= control target key end

     0   :  { %s2243_s0 = inlined_call_operand.hbm [shape: f32[2,8,256], index: 0, kind: input, shape index: {}]   ;;  %s2244_s1 = inlined_call_operand.hbm [shape: f32[2,8,256], index: 1, kind: input, shape index: {}]   ;;  %s2245_s2 = inlined_call_operand.vmem [shape: f32[9,256], index: 2, kind: input, shape index: {}]   ;;  %s2246_s3 = inlined_call_operand.hbm [shape: f32[24,72], index: 3, kind: input, shape index: {}]   ;;  %s2247_s4 = inlined_call_operand.hbm [shape: f32[16,72], index: 4, kind: input, shape index: {}]   ;;  %s2248_s5 = inlined_call_operand.vmem [shape: f32[8,72], index: 5, kind: input, shape index: {}]   ;;  %s2249_s6 = inlined_call_operand.vmem [shape: f32[16,1], index: 6, kind: input, shape index: {}]   ;;  %s2250_s7 = inlined_call_operand.vmem [shape: f32[8,1], index: 7, kind: input, shape index: {}]   ;;  %s2251_s8 = inlined_call_operand.hbm [shape: f32[2,8,256], index: 8, kind: output, shape index: {}]  }
   0x1   :  { %2259 = sst [smem:[#allocation19_spill]] %s2246_s3 }
   0x2   :  { %2260 = sst [smem:[#allocation20_spill]] %s2247_s4 }
   0x3   :  { %13 = vsyncpa [#allocation3], 0 }
   0x4   :  { %15 = vsyncpa [#allocation3 + $0x1], 0 }
   0x5   :  { %16 = vsyncpa [#allocation6], 0 }
   0x6   :  { %18 = vsyncpa [#allocation6 + $0x1], 0 }
   0x7   :  { %19 = vsyncpa [#allocation9], 0 }
   0x8   :  { %20 = vsyncpa [#allocation4], 0 }
   0x9   :  { %22 = vsyncpa [#allocation4 + $0x1], 0  ;;  %s1583_s27 = smov 0   ;;  %s1585_s28 = smov 0  }
   0xa   :  { %s1587_s29 = smov 0   ;;  %s1589_s30 = smov 0  }
   0xb LB: > { %2261 = sst [smem:[#allocation16_spill]] %s1515_s29  ;;  %s1604_s9 = sadd.s32 4294967295, %s1519_s30   ;;  %s1519_s30 = sphi %s1589_s30, %s2282_s30   ;;  %s1515_s29 = sphi %s1587_s29, %s2284_s29   ;;  %s1511_s28 = sphi %s1585_s28, %s2286_s28   ;;  %s1507_s27 = sphi %s1583_s27, %s2285_s27  }
   0xc   : > { %s1128_s10 = sadd.s32 4294967294, %s1519_s30   ;;  %p48_p0 = scmp.ne.s32.totalorder %s1511_s28, %s1507_s27 }
   0xd   : > { %p2252_p1 = scmp.eq.s32.totalorder %s1604_s9, 0  ;;  %p230_p3 = scmp.eq.s32.totalorder %s1128_s10, 1 }
   0xe   : > { %p1129_p5 = scmp.ge.s32.totalorder %s1519_s30, 1  ;;  %p237_p7 = scmp.lt.s32.totalorder %s1519_s30, 3 }
   0xf   : > { %p1613_p4 = por %p2252_p1, %p48_p0  ;;  %p1618_p6 = por %p230_p3, %p48_p0 }
  0x10   : > { %p1623_p8 = pnand %p1129_p5, %p237_p7  ;;  %s1521_s14 = smov [#allocation7]  }
  0x11   : > { %s2262_s11 = scalar_select %p1613_p4, 1, 0 }
  0x12   : > { %s2263_s12 = scalar_select %p1618_p6, 1, 0 }
  0x13   : > { %s2264_s13 = scalar_select %p1623_p8, 1, 0 }
  0x14   : > { %s252_s15 = sshll.u32 %s1521_s14, 4  ;;  %p1233_p9 = pneg %p1623_p8  ;;  %s1627_s15 = int_to_ptr.vmem [resolvable:$true] %s252_s15 }
  0x15   : > { %s1522_s17 = smov [#allocation8]   ;;  %s2266_s3 = sld [smem:[#allocation19_spill]] }
  0x16   : > { %p1634_p11 = pnand %p1233_p9, %p2252_p1  ;;  %s265_s18 = sshll.u32 %s1522_s17, 4  ;;  %s1638_s18 = int_to_ptr.vmem [resolvable:$true] %s265_s18 }
  0x18   : > { %p1327_p13 = pneg %p1634_p11 }
  0x1b   : > { %s1325_s21 = scalar_lea.hbm %s2266_s3, 384 }
  0x1c   : > { %p1326_p12 = scmp.ne.s32.totalorder %s2266_s3, %s1325_s21  ;;  %p1332_p5 = scmp.lt.u32.totalorder %s1325_s21, %s2266_s3 }
  0x1e   : > { %p1328_p0 = pnand %p1327_p13, %p1326_p12 }
  0x20   : > { %p1329_p3 = pneg %p1328_p0 }
  0x22   : > { %p1334_p7 = pnand %p1332_p5, %p1329_p3 }
  0x24   : > { %1337 = shalt.err (!%p1334_p7)
}
  0x25   : > { %s1338_s26 = scalar_lea.vmem %s1627_s15, 384  ;;  %p1346_p2 = scmp.lt.s32.totalorder %s1627_s15, %s1627_s15 }
  0x26   : > { %p1339_p9 = scmp.ne.s32.totalorder %s1627_s15, %s1338_s26  ;;  %p1347_p12 = scmp.lt.s32.totalorder %s1338_s26, %s1338_s26 }
  0x28   : > { %p1341_p10 = pnand %p1339_p9, %p1327_p13  ;;  %p1348_p0 = por %p1347_p12, %p1346_p2 }
  0x2a   : > { %p1342_p1 = pneg %p1341_p10 }
  0x2c   : > { %p1349_p6 = pnand %p1348_p0, %p1342_p1 }
  0x2e   : > { %1352 = shalt.err (!%p1349_p6)
}
  0x2f   : > { %s1523_s10 = smov 128   ;;  %s1524_s14 = smov 8  }
  0x30   : > { %1236 = dma.hbm_to_vmem [thread:$0]  (!%p1634_p11), %s2266_s3, 384, %s1627_s15, [#allocation6], %s1523_s10, %s1523_s10, %s1524_s14  }
  0x31   : > { %s2267_s4 = sld [smem:[#allocation20_spill]] }
  0x37   : > { %s1353_s22 = scalar_lea.hbm %s2267_s4, 256 }
  0x38   : > { %p1354_p2 = scmp.ne.s32.totalorder %s2267_s4, %s1353_s22  ;;  %p1360_p10 = scmp.lt.u32.totalorder %s1353_s22, %s2267_s4 }
  0x3a   : > { %p1356_p1 = pnand %p1354_p2, %p1327_p13 }
  0x3c   : > { %p1357_p6 = pneg %p1356_p1 }
  0x3e   : > { %p1362_p3 = pnand %p1360_p10, %p1357_p6 }
  0x40   : > { %1365 = shalt.err (!%p1362_p3)
}
  0x41   : > { %s1366_s15 = scalar_lea.vmem %s1638_s18, 256  ;;  %p1374_p12 = scmp.lt.s32.totalorder %s1638_s18, %s1638_s18 }
  0x42   : > { %p1367_p5 = scmp.ne.s32.totalorder %s1638_s18, %s1366_s15  ;;  %p1375_p0 = scmp.lt.s32.totalorder %s1366_s15, %s1366_s15 }
  0x44   : > { %p1369_p7 = pnand %p1367_p5, %p1327_p13  ;;  %p1376_p2 = por %p1375_p0, %p1374_p12 }
  0x46   : > { %p1370_p9 = pneg %p1369_p7 }
  0x48   : > { %p1377_p1 = pnand %p1376_p2, %p1370_p9 }
  0x4a   : > { %1380 = shalt.err (!%p1377_p1)
}
  0x4b   : > { %1239 = dma.hbm_to_vmem [thread:$0]  (!%p1634_p11), %s2267_s4, 256, %s1638_s18, [#allocation9], %s1523_s10, %s1523_s10, %s1524_s14  }
  0x4c   : > { %s1693_s20 = sadd.s32 1, %s1519_s30   ;;  %s35_s16 = sadd.s32 1, %s1515_s29 }
  0x4d   : > { %2268 = sst [smem:[#allocation17_spill]] %s1693_s20  ;;  %s32_s21 = ssub.s32 %s1519_s30, %s1693_s20 }
  0x4e   : > { %p42_p13 = scmp.ne.s32.totalorder %s1515_s29, %s1511_s28  ;;  %p33_p6 = scmp.eq.s32.totalorder %s32_s21, 0 }
  0x4f   : > { %p43_p10 = scmp.eq.s32.totalorder %s1519_s30, 0  ;;  %p2269_p3 = scmp.eq.s32.totalorder %s1604_s9, 1 }
  0x50   : > { %p1253_p7 = scmp.lt.s32.totalorder %s1519_s30, 2  ;;  %s288_s24 = sand.u32 1, %s1515_s29  }
  0x51   : > { %p1703_p5 = por %p2269_p3, %p42_p13  ;;  %p44_p9 = por %p43_p10, %p42_p13 }
  0x52   : > { %s1709_s23 = scalar_select %p33_p6, %s1515_s29, %s35_s16  }
  0x53   : > { %s2270_s22 = scalar_select %p1703_p5, 1, 0 }
  0x54   : > { %2271 = sst [smem:[#allocation18_spill]] %s1709_s23  ;;  %s1712_s18 = sshll.u32 %s288_s24, 4 }
  0x55   : > { %s1162_s10 = sshll.u32 %s1519_s30, 8  ;;  %s292_s15 = scalar_lea.vmem [#allocation2], %s1712_s18 }
  0x56   : > { %s1718_s26 = scalar_lea.hbm %s2243_s0, %s1162_s10  ;;  %s300_s17 = sshll.u32 %s292_s15, 4  ;;  %s1721_s17 = int_to_ptr.vmem [resolvable:$true] %s300_s17 }
  0x57   : > { %p1723_p11 = pnand %p1253_p7, %p44_p9  ;;  %s1730_s14 = scalar_lea.hbm %s2244_s1, %s1162_s10 }
  0x58   : > { %s307_s25 = sand.u32 1, %s1519_s30   ;;  %s289_s3 = scalar_lea.sflag [#allocation3], %s288_s24 }
  0x59   : > { %s1381_s4 = scalar_lea.hbm %s1718_s26, 256  ;;  %p1383_p0 = pneg %p1723_p11 }
  0x5a   : > { %p1382_p12 = scmp.ne.s32.totalorder %s1718_s26, %s1381_s4  ;;  %s1386_s29 = scalar_lea.hbm %s2243_s0, 512 }
  0x5b   : > { %p1387_p13 = scmp.lt.u32.totalorder %s1718_s26, %s2243_s0  ;;  %p1388_p6 = scmp.lt.u32.totalorder %s1386_s29, %s1381_s4 }
  0x5c   : > { %p1384_p2 = pnand %p1383_p0, %p1382_p12  ;;  %p1390_p3 = scmp.lt.u32.totalorder %s1381_s4, %s1718_s26 }
  0x5d   : > { %p1389_p10 = por %p1388_p6, %p1387_p13 }
  0x5e   : > { %p1385_p1 = pneg %p1384_p2 }
  0x5f   : > { %p1391_p7 = por %p1390_p3, %p1389_p10 }
  0x61   : > { %p1392_p9 = pnand %p1391_p7, %p1385_p1 }
  0x63   : > { %1395 = shalt.err (!%p1392_p9)
}
  0x64   : > { %s1396_s24 = scalar_lea.vmem %s1721_s17, 256  ;;  %s1525_s23 = smov [#allocation2]  }
  0x65   : > { %p1397_p12 = scmp.ne.s32.totalorder %s1721_s17, %s1396_s24  ;;  %s1401_s10 = sshll.u32 %s1525_s23, 4  ;;  %s1402_s10 = int_to_ptr.vmem [resolvable:$false] %s1401_s10 }
  0x66   : > { %s1403_s20 = scalar_lea.vmem %s1402_s10, 512  ;;  %p1404_p4 = scmp.lt.s32.totalorder %s1721_s17, %s1402_s10 }
  0x67   : > { %p1399_p2 = pnand %p1397_p12, %p1383_p0  ;;  %p1405_p13 = scmp.lt.s32.totalorder %s1403_s20, %s1396_s24 }
  0x69   : > { %p1400_p5 = pneg %p1399_p2  ;;  %p1406_p6 = por %p1405_p13, %p1404_p4 }
  0x6b   : > { %p1407_p10 = pnand %p1406_p6, %p1400_p5 }
  0x6d   : > { %1410 = shalt.err (!%p1407_p10)
}
  0x6e   : > { %1243 = dma.hbm_to_vmem [thread:$0]  (!%p1723_p11), %s1718_s26, 256, %s1721_s17, %s289_s3  }
  0x6f   : > { %s311_s4 = scalar_lea.vmem [#allocation5], %s1712_s18  ;;  %s308_s21 = scalar_lea.sflag [#allocation6], %s307_s25 }
  0x70   : > { %s319_s29 = sshll.u32 %s311_s4, 4  ;;  %s1411_s15 = scalar_lea.hbm %s1730_s14, 256  ;;  %s320_s29 = int_to_ptr.vmem [resolvable:$true] %s319_s29 }
  0x71   : > { %p1412_p4 = scmp.ne.s32.totalorder %s1730_s14, %s1411_s15  ;;  %s1416_s23 = scalar_lea.hbm %s2244_s1, 512 }
  0x72   : > { %p1417_p3 = scmp.lt.u32.totalorder %s1730_s14, %s2244_s1  ;;  %p1418_p7 = scmp.lt.u32.totalorder %s1416_s23, %s1411_s15 }
  0x73   : > { %p1414_p5 = pnand %p1412_p4, %p1383_p0  ;;  %p1420_p12 = scmp.lt.u32.totalorder %s1411_s15, %s1730_s14 }
  0x74   : > { %p1419_p9 = por %p1418_p7, %p1417_p3 }
  0x75   : > { %p1415_p1 = pneg %p1414_p5 }
  0x76   : > { %p1421_p2 = por %p1420_p12, %p1419_p9 }
  0x78   : > { %p1422_p13 = pnand %p1421_p2, %p1415_p1 }
  0x7a   : > { %1425 = shalt.err (!%p1422_p13)
}
  0x7b   : > { %s1426_s3 = scalar_lea.vmem %s320_s29, 256  ;;  %s1526_s18 = smov [#allocation5]  }
  0x7c   : > { %p1427_p6 = scmp.ne.s32.totalorder %s320_s29, %s1426_s3  ;;  %s1431_s26 = sshll.u32 %s1526_s18, 4  ;;  %s1432_s26 = int_to_ptr.vmem [resolvable:$false] %s1431_s26 }
  0x7d   : > { %s1433_s17 = scalar_lea.vmem %s1432_s26, 512  ;;  %p1434_p5 = scmp.lt.s32.totalorder %s320_s29, %s1432_s26 }
  0x7e   : > { %p1429_p10 = pnand %p1427_p6, %p1383_p0  ;;  %p1435_p8 = scmp.lt.s32.totalorder %s1433_s17, %s1426_s3 }
  0x80   : > { %p1430_p4 = pneg %p1429_p10  ;;  %p1436_p3 = por %p1435_p8, %p1434_p5 }
  0x82   : > { %p1437_p7 = pnand %p1436_p3, %p1430_p4 }
  0x84   : > { %1440 = shalt.err (!%p1437_p7)
}
  0x85   : > { %1246 = dma.hbm_to_vmem [thread:$0]  (!%p1723_p11), %s1730_s14, 256, %s320_s29, %s308_s21  }
  0x86   : > { %p2273_p1 = scmp.ne.s32.totalorder %s2264_s13, 0 }
  0x87   : > { %s1783_s25 = sand.u32 (!%p2273_p1), 1, %s1511_s28   ;;  %p2274_p8 = scmp.ne.s32.totalorder (!%p2273_p1), %s2262_s11, 0 }
  0x88   : > { %328 = sbr.rel (%p2273_p1) target bundleno = 979 (0x3d3), region = 52  ;;  %s1786_s4 = sshll.u32 (!%p2273_p1), %s1783_s25, 4 }
  0x89   : > { %s331_s15 = scalar_lea.sflag (!%p2273_p1), [#allocation3], %s1783_s25  ;;  %s334_s16 = scalar_lea.vmem (!%p2273_p1), [#allocation2], %s1786_s4 }
  0x8f   : > { %1486 = dma.done.wait (%p2274_p8), %s331_s15, 256  }
  0x90   : > { %1488 = vsyncadd (%p2274_p8), %s331_s15, 4294967040  ;;  %s339_s13 = sand.u32 1, %s1604_s9   ;;  %s343_s14 = scalar_lea.vmem [#allocation5], %s1786_s4 }
  0x91   : > { %s340_s19 = scalar_lea.sflag [#allocation6], %s339_s13 }
  0x92   : > { %1490 = dma.done.wait (%p2274_p8), %s340_s19, 256  }
  0x93   : > { %1492 = vsyncadd (%p2274_p8), %s340_s19, 4294967040  ;;  %p2275_p11 = scmp.eq.s32.totalorder %s1604_s9, 0 }
  0x95   : > { %1494 = dma.done.wait (%p2275_p11), [#allocation6], 384   ;;  %p2276_p0 = pmov %p2275_p11 }
  0x97   : > { %1496 = vsyncadd (%p2276_p0), [#allocation6], 4294966912  ;;  %p2277_p9 = pmov %p2276_p0 }
  0x98   : > { %p2278_p12 = pmov %p2276_p0 }
  0x99   : > { %1498 = dma.done.wait (%p2277_p9), [#allocation9], 256  }
  0x9a   : > { %1500 = vsyncadd (%p2278_p12), [#allocation9], 4294967040  ;;  %v1808_v0 = vld [vmem:[%s334_s16] sm:$0xff]  ;;  %s1527_s29 = smov 16   ;;  %s1528_s11 = smov 17   ;;  %v1814_v1 = vld [vmem:[%s334_s16 + $0x8] sm:$0xff]  ;;  %v401_v7 = vlaneseq }
  0x9b   : > { %416 = vrot.lane.b32.xlu1 %v1808_v0, %s1527_s29  ;;  %397 = vrot.lane.b32.xlu0 %v1808_v0, %s1528_s11  ;;  %v1820_v2 = vld [vmem:[%s343_s14 + $0x8] sm:$0xff]  ;;  %v1822_v3 = vld [vmem:[%s343_s14] sm:$0xff]  ;;  %s1529_s21 = smov 15   ;;  %s1530_s24 = smov 1   ;;  %v1534_v4 = vmov 0.0   ;;  %v1535_v5 = vmov 0  }
  0x9c   : > { %s1531_s23 = smov 127   ;;  %s1532_s10 = smov 113   ;;  %688 = vmatprep.mubr.f32.mxu1 %v1534_v4  ;;  %779 = vmatprep.mubr.f32.mxu0 %v1534_v4  ;;  %v796_v6 = vld [vmem:[%s2249_s6] sm:$0xff]  ;;  %v1885_v8 = vshrl.u32 %v401_v7, 7  ;;  %v1887_v9 = vand.u32 127, %v401_v7  ;;  %v1899_v13 = vld [vmem:[%s2245_s2 + $0x8] sm:$0xff] }
  0x9d   : > { %s1533_s20 = smov 112   ;;  %1303 = vset.pattern.permute.xlu0 %v1535_v5  ;;  %1304 = vset.pattern.permute.xlu1 %v1535_v5  ;;  %s1536_s3 = smov 111   ;;  %v1894_v12 = vld [vmem:[%s2245_s2] sm:$0xff]  ;;  %vm614_vm8 = vcmask 588800  }
  0x9e   : > { %v425_v10 = vsub.s32 1, %v1885_v8  ;;  %v408_v11 = vsub.s32 0, %v1885_v8  ;;  %vm420_vm0 = vcmp.lt.s32.totalorder %v1887_v9, 16  ;;  %vm403_vm1 = vcmp.lt.s32.totalorder %v1887_v9, 17  ;;  %p2279_p13 = scmp.ne.s32.totalorder %s2270_s22, 0  ;;  %s1537_s19 = smov [#allocation10]  }
  0x9f   : > { %418 = vrot.lane.b32.xlu1 %v1814_v1, %s1527_s29  ;;  %399 = vrot.lane.b32.xlu0 %v1814_v1, %s1528_s11  ;;  %v442_v40 = vsub.s32 2, %v1885_v8  ;;  %v459_v41 = vsub.s32 3, %v1885_v8  ;;  %vm437_vm2 = vcmp.lt.s32.totalorder %v1887_v9, 15  ;;  %vm454_vm3 = vcmp.lt.s32.totalorder %v1887_v9, 1  ;;  %s1445_s14 = sshll.u32 %s1537_s19, 4  ;;  %s1446_s14 = int_to_ptr.vmem [resolvable:$false] %s1445_s14 }
  0xa0   : > { %v1904_v16 = vrot.slane %v1894_v12, %v425_v10  ;;  %v1907_v17 = vrot.slane %v1894_v12, %v408_v11  ;;  %v1910_v18 = vrot.slane %v1899_v13, %v408_v11  ;;  %v1913_v19 = vrot.slane %v1899_v13, %v425_v10  ;;  %s1447_s18 = scalar_lea.vmem %s1446_s14, 512 }
  0xa1   : > { %v1943_v50 = vrot.slane %v1894_v12, %v442_v40  ;;  %v1946_v51 = vrot.slane %v1899_v13, %v442_v40  ;;  %v1950_v52 = vrot.slane %v1894_v12, %v459_v41  ;;  %v1953_v53 = vrot.slane %v1899_v13, %v459_v41 }
  0xa2   : > { %v469_v11 = vsub.s32 4, %v1885_v8  ;;  %vm481_vm4 = vcmp.lt.s32.totalorder %v1887_v9, 127  ;;  %vm498_vm5 = vcmp.lt.s32.totalorder %v1887_v9, 113  ;;  %vm515_vm6 = vcmp.lt.s32.totalorder %v1887_v9, 112 }
  0xa3   : > { %547 = vrot.lane.b32.xlu1 %v1820_v2, %s1528_s11  ;;  %545 = vrot.lane.b32.xlu0 %v1822_v3, %s1528_s11  ;;  %vm532_vm7 = vcmp.lt.s32.totalorder %v1887_v9, 111 }
  0xa7   : > { %555 = vrot.lane.b32.xlu1 %v1820_v2, %s1527_s29  ;;  %553 = vrot.lane.b32.xlu0 %v1822_v3, %s1527_s29 }
  0xab   : > { %435 = vrot.lane.b32.xlu1 %v1814_v1, %s1529_s21  ;;  %433 = vrot.lane.b32.xlu0 %v1808_v0, %s1529_s21 }
  0xaf   : > { %452 = vrot.lane.b32.xlu1 %v1814_v1, %s1530_s24  ;;  %450 = vrot.lane.b32.xlu0 %v1808_v0, %s1530_s24 }
  0xb3   : > { %563 = vrot.lane.b32.xlu1 %v1820_v2, %s1529_s21  ;;  %561 = vrot.lane.b32.xlu0 %v1822_v3, %s1529_s21 }
  0xb7   : > { %571 = vrot.lane.b32.xlu1 %v1820_v2, %s1530_s24  ;;  %569 = vrot.lane.b32.xlu0 %v1822_v3, %s1530_s24 }
  0xbb   : > { %479 = vrot.lane.b32.xlu1 %v1814_v1, %s1531_s23  ;;  %477 = vrot.lane.b32.xlu0 %v1808_v0, %s1531_s23 }
  0xbf   : > { %581 = vrot.lane.b32.xlu1 %v1820_v2, %s1531_s23  ;;  %579 = vrot.lane.b32.xlu0 %v1822_v3, %s1531_s23 }
  0xc3   : > { %496 = vrot.lane.b32.xlu1 %v1814_v1, %s1532_s10  ;;  %494 = vrot.lane.b32.xlu0 %v1808_v0, %s1532_s10 }
  0xc7   : > { %513 = vrot.lane.b32.xlu1 %v1814_v1, %s1533_s20  ;;  %511 = vrot.lane.b32.xlu0 %v1808_v0, %s1533_s20 }
  0xcb   : > { %589 = vrot.lane.b32.xlu1 %v1820_v2, %s1532_s10  ;;  %587 = vrot.lane.b32.xlu0 %v1822_v3, %s1532_s10 }
  0xcf   : > { %597 = vrot.lane.b32.xlu1 %v1820_v2, %s1533_s20  ;;  %595 = vrot.lane.b32.xlu0 %v1822_v3, %s1533_s20 }
  0xd3   : > { %530 = vrot.lane.b32.xlu1 %v1814_v1, %s1536_s3  ;;  %528 = vrot.lane.b32.xlu0 %v1808_v0, %s1536_s3 }
  0xd7   : > { %605 = vrot.lane.b32.xlu1 %v1820_v2, %s1536_s3  ;;  %603 = vrot.lane.b32.xlu0 %v1822_v3, %s1536_s3 }
  0xdb   : > { %800 = vperm.xlu0 %1303, %v796_v6  }
 0x10d   : > { %v417_v14 = vpop.permute.xlu1 %416  ;;  %v398_v15 = vpop.permute.xlu0 %397 }
 0x111   : > { %v419_v20 = vpop.permute.xlu1 %418  ;;  %v400_v21 = vpop.permute.xlu0 %399 }
 0x112   : > { %v421_v22 = vsel %vm420_vm0, %v417_v14, %v419_v20  ;;  %v422_v23 = vsel %vm420_vm0, %v419_v20, %v417_v14  ;;  %v404_v24 = vsel %vm403_vm1, %v398_v15, %v400_v21  ;;  %v405_v25 = vsel %vm403_vm1, %v400_v21, %v398_v15 }
 0x113   : > { %v431_v26 = vmul.f32 %v1904_v16, %v422_v23  ;;  %v414_v27 = vmul.f32 %v1907_v17, %v405_v25  ;;  %v415_v28 = vmul.f32 %v1910_v18, %v404_v24  ;;  %v432_v29 = vmul.f32 %v1913_v19, %v421_v22 }
 0x114   : > { %v486_v14 = vsub.s32 5, %v1885_v8  ;;  %v1975_v23 = vrot.slane %v1899_v13, %v469_v11  ;;  %v1978_v24 = vrot.slane %v1894_v12, %v469_v11 }
 0x115   : > { %v548_v30 = vpop.permute.xlu1 %547  ;;  %v546_v31 = vpop.permute.xlu0 %545  ;;  %v1165_v32 = vpack.c.bf16 %v432_v29, %v415_v28  ;;  %v1167_v33 = vpack.c.bf16 %v431_v26, %v414_v27 }
 0x116   : > { %v549_v34 = vsel %vm403_vm1, %v546_v31, %v548_v30  ;;  %v550_v35 = vsel %vm403_vm1, %v548_v30, %v546_v31  ;;  %v1985_v27 = vrot.slane %v1894_v12, %v486_v14  ;;  %v1988_v28 = vrot.slane %v1899_v13, %v486_v14 }
 0x117   : > { %1166 = vmatprep.subr.bf16.mxu1 %v1165_v32  ;;  %v551_v42 = vmul.f32 %v550_v35, %v1907_v17  ;;  %v552_v44 = vmul.f32 %v549_v34, %v1910_v18 }
 0x118   : > { %1168 = vmatpush1.bf16.msra.mxu1 %v1167_v33 }
 0x119   : > { %v556_v36 = vpop.permute.xlu1 %555  ;;  %v554_v37 = vpop.permute.xlu0 %553 }
 0x11a   : > { %v557_v38 = vsel %vm420_vm0, %v554_v37, %v556_v36  ;;  %v558_v39 = vsel %vm420_vm0, %v556_v36, %v554_v37  ;;  %v476_v37 = vmul.f32 %v1975_v23, %v1814_v1  ;;  %v578_v1 = vmul.f32 %v1975_v23, %v1820_v2 }
 0x11b   : > { %v559_v43 = vmul.f32 %v558_v39, %v1904_v16  ;;  %v560_v45 = vmul.f32 %v557_v38, %v1913_v19  ;;  %v475_v38 = vmul.f32 %v1978_v24, %v1808_v0  ;;  %v577_v0 = vmul.f32 %v1978_v24, %v1822_v3 }
 0x11d   : > { %v436_v46 = vpop.permute.xlu1 %435  ;;  %v434_v47 = vpop.permute.xlu0 %433  ;;  %v1181_v48 = vpack.c.bf16 %v560_v45, %v552_v44  ;;  %v1183_v49 = vpack.c.bf16 %v559_v43, %v551_v42 }
 0x11e   : > { %v438_v54 = vsel %vm437_vm2, %v434_v47, %v436_v46  ;;  %v439_v55 = vsel %vm437_vm2, %v436_v46, %v434_v47 }
 0x11f   : > { %1182 = vmatprep.subr.bf16.mxu0 %v1181_v48  ;;  %v448_v60 = vmul.f32 %v1943_v50, %v439_v55  ;;  %v449_v61 = vmul.f32 %v1946_v51, %v438_v54 }
 0x120   : > { %1184 = vmatpush1.bf16.msra.mxu0 %v1183_v49  ;;  %v503_v49 = vsub.s32 6, %v1885_v8 }
 0x121   : > { %v453_v56 = vpop.permute.xlu1 %452  ;;  %v451_v57 = vpop.permute.xlu0 %450 }
 0x122   : > { %v455_v58 = vsel %vm454_vm3, %v451_v57, %v453_v56  ;;  %v456_v59 = vsel %vm454_vm3, %v453_v56, %v451_v57  ;;  %v520_v56 = vsub.s32 7, %v1885_v8 }
 0x123   : > { %v465_v62 = vmul.f32 %v1950_v52, %v456_v59  ;;  %v466_v63 = vmul.f32 %v1953_v53, %v455_v58 }
 0x124   : > { %v2028_v8 = vrot.slane %v1899_v13, %v520_v56 }
 0x125   : > { %v564_v5 = vpop.permute.xlu1 %563  ;;  %v562_v6 = vpop.permute.xlu0 %561  ;;  %v1169_v7 = vpack.c.bf16 %v466_v63, %v449_v61  ;;  %v1171_v10 = vpack.c.bf16 %v465_v62, %v448_v60  ;;  %v2018_v61 = vrot.slane %v1894_v12, %v503_v49  ;;  %v2021_v62 = vrot.slane %v1899_v13, %v503_v49 }
 0x126   : > { %v565_v15 = vsel %vm437_vm2, %v562_v6, %v564_v5  ;;  %v566_v20 = vsel %vm437_vm2, %v564_v5, %v562_v6  ;;  %v2025_v63 = vrot.slane %v1894_v12, %v520_v56 }
 0x127   : > { %1170 = vmatprep.subr.bf16.mxu1 %v1169_v7  ;;  %v567_v29 = vmul.f32 %v566_v20, %v1943_v50  ;;  %v568_v30 = vmul.f32 %v565_v15, %v1946_v51 }
 0x128   : > { %1172 = vmatpush1.bf16.msra.mxu1 %v1171_v10 }
 0x129   : > { %v572_v21 = vpop.permute.xlu1 %571  ;;  %v570_v22 = vpop.permute.xlu0 %569 }
 0x12a   : > { %v573_v25 = vsel %vm454_vm3, %v570_v22, %v572_v21  ;;  %v574_v26 = vsel %vm454_vm3, %v572_v21, %v570_v22 }
 0x12b   : > { %v575_v31 = vmul.f32 %v574_v26, %v1950_v52  ;;  %v576_v32 = vmul.f32 %v573_v25, %v1953_v53 }
 0x12d   : > { %v480_v33 = vpop.permute.xlu1 %479  ;;  %v478_v34 = vpop.permute.xlu0 %477  ;;  %v1185_v35 = vpack.c.bf16 %v576_v32, %v568_v30  ;;  %v1187_v36 = vpack.c.bf16 %v575_v31, %v567_v29 }
 0x12e   : > { %v482_v39 = vsel %vm481_vm4, %v478_v34, %v480_v33  ;;  %v483_v40 = vsel %vm481_vm4, %v480_v33, %v478_v34 }
 0x12f   : > { %v492_v41 = vmul.f32 %v1985_v27, %v482_v39  ;;  %v493_v42 = vmul.f32 %v1988_v28, %v483_v40  ;;  %1186 = vmatprep.subr.bf16.mxu0 %v1185_v35  ;;  %v2058_v39 = vld [vmem:[%s2245_s2 + $0x10] ss:$0 sm:$0xff]  ;;  %v2063_v40 = vld [vmem:[%s2245_s2 + $0x18] ss:$0 sm:$0xff] }
 0x130   : > { %1188 = vmatpush1.bf16.msra.mxu0 %v1187_v36 }
 0x131   : > { %v582_v43 = vpop.permute.xlu1 %581  ;;  %v580_v44 = vpop.permute.xlu0 %579  ;;  %v1173_v45 = vpack.c.bf16 %v493_v42, %v476_v37  ;;  %v1175_v46 = vpack.c.bf16 %v492_v41, %v475_v38 }
 0x132   : > { %v583_v47 = vsel %vm481_vm4, %v580_v44, %v582_v43  ;;  %v584_v48 = vsel %vm481_vm4, %v582_v43, %v580_v44 }
 0x133   : > { %v585_v54 = vmul.f32 %v583_v47, %v1985_v27  ;;  %v586_v55 = vmul.f32 %v584_v48, %v1988_v28  ;;  %1174 = vmatprep.subr.bf16.mxu1 %v1173_v45  ;;  %v611_v47 = vld [vmem:[#allocation7] sm:$0xff] }
 0x134   : > { %1176 = vmatpush1.bf16.msra.mxu1 %v1175_v46 }
 0x135   : > { %v497_v57 = vpop.permute.xlu1 %496  ;;  %v495_v58 = vpop.permute.xlu0 %494  ;;  %v1189_v59 = vpack.c.bf16 %v586_v55, %v578_v1  ;;  %v1191_v60 = vpack.c.bf16 %v585_v54, %v577_v0 }
 0x136   : > { %v499_v5 = vsel %vm498_vm5, %v495_v58, %v497_v57  ;;  %v500_v6 = vsel %vm498_vm5, %v497_v57, %v495_v58  ;;  %v707_v58 = vld [vmem:[#allocation8] sm:$0xff] }
 0x137   : > { %1190 = vmatprep.subr.bf16.mxu0 %v1189_v59  ;;  %v509_v12 = vmul.f32 %v2018_v61, %v499_v5  ;;  %v510_v13 = vmul.f32 %v2021_v62, %v500_v6  ;;  %v612_v59 = vld [vmem:[#allocation7 + $0x8] sm:$0xff] }
 0x138   : > { %1192 = vmatpush1.bf16.msra.mxu0 %v1191_v60  ;;  %v708_v60 = vld [vmem:[#allocation8 + $0x8] sm:$0xff] }
 0x139   : > { %v514_v7 = vpop.permute.xlu1 %513  ;;  %v512_v10 = vpop.permute.xlu0 %511 }
 0x13a   : > { %v516_v11 = vsel %vm515_vm6, %v512_v10, %v514_v7  ;;  %v517_v14 = vsel %vm515_vm6, %v514_v7, %v512_v10 }
 0x13b   : > { %v526_v15 = vmul.f32 %v2025_v63, %v516_v11  ;;  %v527_v20 = vmul.f32 %v2028_v8, %v517_v14 }
 0x13d   : > { %v590_v21 = vpop.permute.xlu1 %589  ;;  %v588_v22 = vpop.permute.xlu0 %587  ;;  %v1177_v25 = vpack.c.bf16 %v527_v20, %v510_v13  ;;  %v1179_v26 = vpack.c.bf16 %v526_v15, %v509_v12 }
 0x13e   : > { %v591_v29 = vsel %vm498_vm5, %v588_v22, %v590_v21  ;;  %v592_v30 = vsel %vm498_vm5, %v590_v21, %v588_v22 }
 0x13f   : > { %1178 = vmatprep.subr.bf16.mxu1 %v1177_v25  ;;  %v593_v35 = vmul.f32 %v591_v29, %v2018_v61  ;;  %v594_v36 = vmul.f32 %v592_v30, %v2021_v62 }
 0x140   : > { %1180 = vmatpush1.bf16.msra.mxu1 %v1179_v26 }
 0x141   : > { %v598_v31 = vpop.permute.xlu1 %597  ;;  %v596_v32 = vpop.permute.xlu0 %595 }
 0x142   : > { %v599_v33 = vsel %vm515_vm6, %v596_v32, %v598_v31  ;;  %v600_v34 = vsel %vm515_vm6, %v598_v31, %v596_v32 }
 0x143   : > { %v601_v37 = vmul.f32 %v599_v33, %v2025_v63  ;;  %v602_v38 = vmul.f32 %v600_v34, %v2028_v8 }
 0x145   : > { %v531_v41 = vpop.permute.xlu1 %530  ;;  %v529_v42 = vpop.permute.xlu0 %528  ;;  %v1193_v43 = vpack.c.bf16 %v602_v38, %v594_v36  ;;  %v1195_v44 = vpack.c.bf16 %v601_v37, %v593_v35  ;;  %v613_v35 = vld [vmem:[#allocation7 + $0x10] sm:$0xff] }
 0x146   : > { %v533_v45 = vsel %vm532_vm7, %v529_v42, %v531_v41  ;;  %v534_v46 = vsel %vm532_vm7, %v531_v41, %v529_v42  ;;  %v797_v42 = vld [vmem:[%s2249_s6 + $0x8] sm:$0xff] }
 0x147   : > { %v543_v1 = vmul.f32 %v2058_v39, %v533_v45  ;;  %v544_v0 = vmul.f32 %v2063_v40, %v534_v46  ;;  %1194 = vmatprep.subr.bf16.mxu0 %v1193_v43  ;;  %v981_v43 = vld [vmem:[%s2250_s7] sm:$0xff] }
 0x148   : > { %1196 = vmatpush1.bf16.msra.mxu0 %v1195_v44 }
 0x149   : > { %v606_v48 = vpop.permute.xlu1 %605  ;;  %v604_v49 = vpop.permute.xlu0 %603  ;;  %640 = vmatprep.subr.mxu1 %v544_v0 }
 0x14a   : > { %v607_v54 = vsel %vm532_vm7, %v604_v49, %v606_v48  ;;  %v608_v55 = vsel %vm532_vm7, %v606_v48, %v604_v49  ;;  %641 = vmatpush1.msra.mxu1 %v543_v1 }
 0x14b   : > { %v609_v56 = vmul.f32 %v2058_v39, %v607_v54  ;;  %v610_v57 = vmul.f32 %v2063_v40, %v608_v55  ;;  %1147 = vmatmul.mubr.msk.f32.vlgmr.msra.gmra.mrb[0].mxu1 %vm614_vm8, %v611_v47 }
 0x14c   : > { %694 = vmatprep.mubr.f32.mxu1 %v1534_v4 }
 0x14d   : > { %731 = vmatprep.subr.mxu0 %v610_v57 }
 0x14e   : > { %732 = vmatpush1.msra.mxu0 %v609_v56 }
 0x14f   : > { %1150 = vmatmul.mubr.msk.f32.vlgmr.msra.gmra.mrb[0].mxu0 %vm614_vm8, %v707_v58  ;;  %1148 = vmatmul.mubr.msk.f32.gmra.mrb[2].mxu1 %vm614_vm8, %v612_v59 }
 0x150   : > { %785 = vmatprep.mubr.f32.mxu0 %v1534_v4  ;;  %700 = vmatprep.mubr.f32.mxu1 %v1534_v4 }
 0x153   : > { %1151 = vmatmul.mubr.msk.f32.gmra.mrb[2].mxu0 %vm614_vm8, %v708_v60  ;;  %1149 = vmatmul.mubr.msk.f32.gmra.mrb[4].mxu1 %vm614_vm8, %v613_v35 }
 0x154   : > { %972 = vmatprep.mubr.f32.mxu0 %v1534_v4 }
 0x15a   : > { %v801_v10 = vpop.permute.xlu0 %800 }
 0x21e   : > { %v690_v5 = vpop.f32.mrb[0].mxu1 }
 0x21f   : > { %v692_v6 = vpop.f32.mrb[1].mxu1 }
 0x222   : > { %v781_v7 = vpop.f32.mrb[0].mxu0  ;;  %v696_v33 = vpop.f32.mrb[2].mxu1 }
 0x223   : > { %v792_v11 = vadd.f32 %v781_v7, %v690_v5  ;;  %v783_v14 = vpop.f32.mrb[1].mxu0  ;;  %v698_v37 = vpop.f32.mrb[3].mxu1 }
 0x224   : > { %v793_v12 = vadd.f32 %v783_v14, %v692_v6 }
 0x225   : > { %v808_v13 = vadd.f32 %v801_v10, %v792_v11 }
 0x226   : > { %v809_v15 = vadd.f32 %v801_v10, %v793_v12  ;;  %v787_v34 = vpop.f32.mrb[2].mxu0 }
 0x227   : > { %v1152_v20 = vmul.f32 -1.442695, %v808_v13  ;;  %v2115_v36 = vadd.f32 %v787_v34, %v696_v33  ;;  %v789_v38 = vpop.f32.mrb[3].mxu0 }
 0x228   : > { %v1153_v21 = vmul.f32 -1.442695, %v809_v15  ;;  %v2122_v41 = vadd.f32 %v789_v38, %v698_v37 }
 0x229   : > { %1305 = vpow2.f32 %v1152_v20 }
 0x22a   : > { %1307 = vpow2.f32 %v1153_v21 }
 0x233   : > { %v1306_v22 = vpop.eup %1305 }
 0x234   : > { %v1308_v25 = vpop.eup %1307  ;;  %v818_v26 = vadd.f32 1.0, %v1306_v22 }
 0x235   : > { %v819_v29 = vadd.f32 1.0, %v1308_v25 }
 0x236   : > { %1309 = vrcp.f32 %v818_v26 }
 0x237   : > { %1311 = vrcp.f32 %v819_v29 }
 0x240   : > { %v1310_v4 = vpop.eup %1309 }
 0x241   : > { %v2086_v30 = vmul.f32 %v1310_v4, %v1822_v3  ;;  %v1312_v31 = vpop.eup %1311 }
 0x242   : > { %v2093_v32 = vmul.f32 %v1312_v31, %v1820_v2 }
 0x243   : > { %846 = vrot.lane.b32.xlu0 %v2086_v30, %s1527_s29  ;;  %838 = vrot.lane.b32.xlu1 %v2086_v30, %s1528_s11  ;;  %v870_v29 = vmul.f32 %v2086_v30, %v1978_v24 }
 0x247   : > { %854 = vrot.lane.b32.xlu0 %v2086_v30, %s1529_s21  ;;  %840 = vrot.lane.b32.xlu1 %v2093_v32, %s1528_s11 }
 0x24b   : > { %862 = vrot.lane.b32.xlu0 %v2086_v30, %s1530_s24  ;;  %848 = vrot.lane.b32.xlu1 %v2093_v32, %s1527_s29 }
 0x24f   : > { %872 = vrot.lane.b32.xlu0 %v2086_v30, %s1531_s23  ;;  %856 = vrot.lane.b32.xlu1 %v2093_v32, %s1529_s21 }
 0x253   : > { %880 = vrot.lane.b32.xlu0 %v2086_v30, %s1532_s10  ;;  %864 = vrot.lane.b32.xlu1 %v2093_v32, %s1530_s24 }
 0x257   : > { %888 = vrot.lane.b32.xlu0 %v2086_v30, %s1533_s20  ;;  %874 = vrot.lane.b32.xlu1 %v2093_v32, %s1531_s23 }
 0x25b   : > { %896 = vrot.lane.b32.xlu0 %v2086_v30, %s1536_s3  ;;  %882 = vrot.lane.b32.xlu1 %v2093_v32, %s1532_s10 }
 0x25f   : > { %805 = vperm.xlu0 %1303, %v797_v42   ;;  %890 = vrot.lane.b32.xlu1 %v2093_v32, %s1533_s20  ;;  %s1164_s20 = sshll.u32 %s1604_s9, 8  ;;  %s1002_s9 = scalar_lea.sflag [#allocation4], %s1783_s25 }
 0x260   : > { %s2199_s13 = scalar_lea.hbm %s2251_s8, %s1164_s20 }
 0x263   : > { %898 = vrot.lane.b32.xlu1 %v2093_v32, %s1536_s3  ;;  %s388_s3 = scalar_lea.vmem [#allocation10], %s1786_s4 }
 0x264   : > { %s1016_s17 = sshll.u32 %s388_s3, 4  ;;  %s2201_s17 = int_to_ptr.vmem [resolvable:$true] %s1016_s17 }
 0x265   : > { %s1441_s4 = scalar_lea.vmem %s2201_s17, 256  ;;  %p1448_p4 = scmp.lt.s32.totalorder %s2201_s17, %s1446_s14 }
 0x266   : > { %p1442_p2 = scmp.ne.s32.totalorder %s2201_s17, %s1441_s4  ;;  %p1449_p5 = scmp.lt.s32.totalorder %s1447_s18, %s1441_s4 }
 0x267   : > { %984 = vperm.xlu1 %1304, %v981_v43  }
 0x268   : > { %p1443_p6 = pnand %p1442_p2, %p2279_p13  ;;  %p1450_p3 = por %p1449_p5, %p1448_p4 }
 0x26a   : > { %p1444_p10 = pneg %p1443_p6 }
 0x26c   : > { %p1451_p7 = pnand %p1450_p3, %p1444_p10 }
 0x2b5   : > { %v847_v44 = vpop.permute.xlu0 %846  ;;  %v839_v45 = vpop.permute.xlu1 %838 }
 0x2b9   : > { %v855_v46 = vpop.permute.xlu0 %854  ;;  %v841_v1 = vpop.permute.xlu1 %840 }
 0x2ba   : > { %v842_v0 = vsel %vm403_vm1, %v839_v45, %v841_v1  ;;  %v843_v47 = vsel %vm403_vm1, %v841_v1, %v839_v45 }
 0x2bb   : > { %v844_v56 = vmul.f32 %v843_v47, %v1907_v17  ;;  %v845_v57 = vmul.f32 %v842_v0, %v1910_v18 }
 0x2bd   : > { %v863_v48 = vpop.permute.xlu0 %862  ;;  %v849_v49 = vpop.permute.xlu1 %848 }
 0x2be   : > { %v850_v54 = vsel %vm420_vm0, %v847_v44, %v849_v49  ;;  %v851_v55 = vsel %vm420_vm0, %v849_v49, %v847_v44 }
 0x2bf   : > { %v852_v58 = vmul.f32 %v851_v55, %v1904_v16  ;;  %v853_v59 = vmul.f32 %v850_v54, %v1913_v19 }
 0x2c1   : > { %v1199_v60 = vpack.c.bf16 %v852_v58, %v844_v56  ;;  %v857_v5 = vpop.permute.xlu1 %856  ;;  %v1197_v6 = vpack.c.bf16 %v853_v59, %v845_v57  ;;  %v873_v7 = vpop.permute.xlu0 %872 }
 0x2c2   : > { %v858_v10 = vsel %vm437_vm2, %v855_v46, %v857_v5  ;;  %v859_v11 = vsel %vm437_vm2, %v857_v5, %v855_v46 }
 0x2c3   : > { %1198 = vmatprep.subr.bf16.mxu0 %v1197_v6  ;;  %v860_v18 = vmul.f32 %v859_v11, %v1943_v50  ;;  %v861_v19 = vmul.f32 %v858_v10, %v1946_v51 }
 0x2c4   : > { %1200 = vmatpush1.bf16.msra.mxu0 %v1199_v60 }
 0x2c5   : > { %v865_v14 = vpop.permute.xlu1 %864  ;;  %v881_v15 = vpop.permute.xlu0 %880 }
 0x2c6   : > { %v866_v17 = vsel %vm454_vm3, %v863_v48, %v865_v14  ;;  %v867_v16 = vsel %vm454_vm3, %v865_v14, %v863_v48 }
 0x2c7   : > { %v868_v12 = vmul.f32 %v867_v16, %v1950_v52  ;;  %v869_v13 = vmul.f32 %v866_v17, %v1953_v53  ;;  %v871_v52 = vmul.f32 %v2093_v32, %v1975_v23 }
 0x2c9   : > { %v1203_v20 = vpack.c.bf16 %v868_v12, %v860_v18  ;;  %v875_v21 = vpop.permute.xlu1 %874  ;;  %v1201_v22 = vpack.c.bf16 %v869_v13, %v861_v19  ;;  %v889_v33 = vpop.permute.xlu0 %888 }
 0x2ca   : > { %v876_v25 = vsel %vm481_vm4, %v873_v7, %v875_v21  ;;  %v877_v26 = vsel %vm481_vm4, %v875_v21, %v873_v7 }
 0x2cb   : > { %v878_v50 = vmul.f32 %v876_v25, %v1985_v27  ;;  %v879_v51 = vmul.f32 %v877_v26, %v1988_v28  ;;  %1202 = vmatprep.subr.bf16.mxu0 %v1201_v22 }
 0x2cc   : > { %1204 = vmatpush1.bf16.msra.mxu0 %v1203_v20 }
 0x2cd   : > { %v1207_v53 = vpack.c.bf16 %v878_v50, %v870_v29  ;;  %v883_v4 = vpop.permute.xlu1 %882  ;;  %v1205_v31 = vpack.c.bf16 %v879_v51, %v871_v52  ;;  %v897_v38 = vpop.permute.xlu0 %896 }
 0x2ce   : > { %v884_v34 = vsel %vm498_vm5, %v881_v15, %v883_v4  ;;  %v885_v24 = vsel %vm498_vm5, %v883_v4, %v881_v15 }
 0x2cf   : > { %1206 = vmatprep.subr.bf16.mxu0 %v1205_v31  ;;  %v886_v30 = vmul.f32 %v884_v34, %v2018_v61  ;;  %v887_v32 = vmul.f32 %v885_v24, %v2021_v62  ;;  %v904_v62 = vld [vmem:[%s2248_s5] sm:$0xff] }
 0x2d0   : > { %1208 = vmatpush1.bf16.msra.mxu0 %v1207_v53 }
 0x2d1   : > { %v891_v27 = vpop.permute.xlu1 %890 }
 0x2d2   : > { %v892_v28 = vsel %vm515_vm6, %v889_v33, %v891_v27  ;;  %v893_v23 = vsel %vm515_vm6, %v891_v27, %v889_v33 }
 0x2d3   : > { %v894_v35 = vmul.f32 %v892_v28, %v2025_v63  ;;  %v895_v37 = vmul.f32 %v893_v23, %v2028_v8  ;;  %v702_v63 = vpop.f32.mrb[4].mxu1 }
 0x2d4   : > { %v704_v8 = vpop.f32.mrb[5].mxu1 }
 0x2d5   : > { %v1211_v42 = vpack.c.bf16 %v894_v35, %v886_v30  ;;  %v899_v43 = vpop.permute.xlu1 %898  ;;  %v1209_v44 = vpack.c.bf16 %v895_v37, %v887_v32 }
 0x2d6   : > { %v901_v45 = vsel %vm532_vm7, %v899_v43, %v897_v38  ;;  %v900_v46 = vsel %vm532_vm7, %v897_v38, %v899_v43 }
 0x2d7   : > { %v903_v1 = vmul.f32 %v2063_v40, %v901_v45  ;;  %1210 = vmatprep.subr.bf16.mxu0 %v1209_v44  ;;  %v902_v61 = vmul.f32 %v2058_v39, %v900_v46 }
 0x2d8   : > { %1212 = vmatpush1.bf16.msra.mxu0 %v1211_v42 }
 0x2d9   : > { %924 = vmatprep.subr.mxu0 %v903_v1 }
 0x2dc   : > { %925 = vmatpush1.msra.mxu0 %v902_v61 }
 0x2dd   : > { %1156 = vmatmul.mubr.msk.f32.vlgmr.msra.gmra.mrb[4].mxu0 %vm614_vm8, %v904_v62 }
 0x2de   : > { %v806_v0 = vpop.permute.xlu0 %805 }
 0x2df   : > { %v810_v9 = vadd.f32 %v806_v0, %v2115_v36  ;;  %v811_v47 = vadd.f32 %v806_v0, %v2122_v41 }
 0x2e1   : > { %v1154_v40 = vmul.f32 -1.442695, %v810_v9  ;;  %v1155_v48 = vmul.f32 -1.442695, %v811_v47 }
 0x2e3   : > { %1313 = vpow2.f32 %v1154_v40 }
 0x2e4   : > { %1315 = vpow2.f32 %v1155_v48 }
 0x2e6   : > { %v985_v57 = vpop.permute.xlu1 %984 }
 0x2ed   : > { %v1314_v49 = vpop.eup %1313 }
 0x2ee   : > { %v1316_v39 = vpop.eup %1315  ;;  %v830_v54 = vadd.f32 1.0, %v1314_v49 }
 0x2ef   : > { %v831_v55 = vadd.f32 1.0, %v1316_v39 }
 0x2f0   : > { %1317 = vrcp.f32 %v830_v54 }
 0x2f1   : > { %1319 = vrcp.f32 %v831_v55 }
 0x2fa   : > { %v1318_v41 = vpop.eup %1317 }
 0x2fb   : > { %v1320_v6 = vpop.eup %1319  ;;  %v993_v7 = vsub.f32 1.0, %v1318_v41  ;;  %v991_v16 = vmul.f32 %v1318_v41, %v1822_v3 }
 0x2fc   : > { %v994_v11 = vsub.f32 1.0, %v1320_v6  ;;  %v992_v19 = vmul.f32 %v1320_v6, %v1820_v2 }
 0x3b0   : > { %v974_v56 = vpop.f32.mrb[4].mxu0 }
 0x3b1   : > { %v979_v58 = vadd.f32 %v974_v56, %v702_v63  ;;  %v976_v59 = vpop.f32.mrb[5].mxu0 }
 0x3b2   : > { %v980_v60 = vadd.f32 %v976_v59, %v704_v8 }
 0x3b3   : > { %v987_v36 = vadd.f32 %v985_v57, %v979_v58 }
 0x3b4   : > { %v988_v5 = vadd.f32 %v985_v57, %v980_v60 }
 0x3b5   : > { %1321 = vtanh.f32 %v987_v36 }
 0x3b6   : > { %1323 = vtanh.f32 %v988_v5 }
 0x3bf   : > { %v1322_v10 = vpop.eup %1321 }
 0x3c0   : > { %v1324_v14 = vpop.eup %1323  ;;  %v995_v17 = vmul.f32 %v1322_v10, %v993_v7 }
 0x3c1   : > { %v996_v18 = vmul.f32 %v1324_v14, %v994_v11 }
 0x3c2   : > { %v997_v12 = vadd.f32 %v995_v17, %v991_v16 }
 0x3c3   : > { %v998_v13 = vadd.f32 %v996_v18, %v992_v19 }
 0x3c4   : > { %999 = vst [vmem:[%s388_s3] sm:$0xff] %v997_v12 }
 0x3c5   : > { %1000 = vst [vmem:[%s388_s3 + $0x8] sm:$0xff] %v998_v13 }
 0x3c6   : > { %1454 = shalt.err (!%p1451_p7)
}
 0x3c7   : > { %s1455_s25 = scalar_lea.hbm %s2199_s13, 256  ;;  %s1459_s11 = scalar_lea.hbm %s2251_s8, 512 }
 0x3c8   : > { %p1456_p1 = scmp.ne.s32.totalorder %s2199_s13, %s1455_s25  ;;  %p1460_p0 = scmp.lt.u32.totalorder %s2199_s13, %s2251_s8 }
 0x3c9   : > { %p1461_p9 = scmp.lt.u32.totalorder %s1459_s11, %s1455_s25  ;;  %p1463_p2 = scmp.lt.u32.totalorder %s1455_s25, %s2199_s13 }
 0x3ca   : > { %p1457_p8 = pnand %p1456_p1, %p2279_p13 }
 0x3cb   : > { %p1462_p12 = por %p1461_p9, %p1460_p0 }
 0x3cc   : > { %p1458_p11 = pneg %p1457_p8 }
 0x3cd   : > { %p1464_p6 = por %p1463_p2, %p1462_p12 }
 0x3cf   : > { %p1465_p10 = pnand %p1464_p6, %p1458_p11 }
 0x3d1   : > { %1468 = shalt.err (!%p1465_p10)
}
 0x3d2   : > { %1231 = dma.vmem_to_hbm [thread:$0]  (%p2279_p13), %s2201_s17, 256, %s2199_s13, %s1002_s9  }
 0x3d3 PF: > { %s1028_s23 = sand.u32 1, %s1507_s27   ;;  %p2280_p4 = scmp.ne.s32.totalorder %s2263_s12, 0 }
 0x3d4   : > { %p2281_p5 = scmp.ge.s32.totalorder %s1519_s30, 2  ;;  %s1029_s10 = scalar_lea.sflag [#allocation4], %s1028_s23 }
 0x3d6   : > { %p1248_p3 = pnand %p2281_p5, %p2280_p4 }
 0x3d8   : > { %1502 = dma.done.wait (!%p1248_p3), %s1029_s10, 256  }
 0x3d9   : > { %1504 = vsyncadd (!%p1248_p3), %s1029_s10, 4294967040  ;;  %s2282_s30 = sld [smem:[#allocation17_spill]]  ;;  %s2283_s20 = sld [smem:[#allocation16_spill]] }
 0x3da   : > { %s2284_s29 = sld [smem:[#allocation18_spill]]  ;;  %s2285_s27 = smov %s1511_s28 }
 0x3df   : > { %p25_p7 = scmp.ge.s32.totalorder %s2282_s30, 4   ;;  %s2286_s28 = smov %s2283_s20 }
 0x3e1   :  { %27 = sbr.rel (!%p25_p7) target bundleno = 11 (0xb), region = 118 }
 0x3e8   :  { %1034 = vsyncpa [#allocation3], 1 }
 0x3e9   :  { %1036 = vsyncpa [#allocation3 + $0x1], 1 }
 0x3ea   :  { %1037 = vsyncpa [#allocation6], 1 }
 0x3eb   :  { %1039 = vsyncpa [#allocation6 + $0x1], 1 }
 0x3ec   :  { %1040 = vsyncpa [#allocation9], 1 }
 0x3ed   :  { %1041 = vsyncpa [#allocation4], 1 }
 0x3ee   :  { %1043 = vsyncpa [#allocation4 + $0x1], 1 }

</bundles_post_ra>
